<compile_context>
chip_gen: v6e
topology: v6e:2x2x1
jax: 0.10.0
libtpu: 0.0.40
codegen_flags: <defaults>
</compile_context>

<pallas_src>
from typing import Tuple

import numpy as np
import jax
import jax.numpy as jnp
from jax.experimental import pallas as pl
from jax.experimental.pallas import tpu as pltpu


_BLOCK_BUDGET_BYTES = 24 * 1024 * 1024   # budget for resident + double-buffered tiles
_VMEM_LIMIT_BYTES = 32 * 1024 * 1024     # within physical VMEM on v5e/v6e (128M), v7x (64M)


# ----------------------------------------------------------------------------
# Kernels
# ----------------------------------------------------------------------------
def _unpatch_gemm_kernel(w_ref, b_ref, x_ref, o_ref):
    # w_ref: [N, K] (VMEM-resident), b_ref: [N, 1] (VMEM-resident),
    # x_ref: [1, K, L] (streamed),   o_ref: [1, N, L] (streamed, lane-dense).
    acc = jnp.dot(w_ref[...], x_ref[0], preferred_element_type=jnp.float32)
    o_ref[0] = (acc + b_ref[...]).astype(o_ref.dtype)


def _unpatch_gemm_ktiled_kernel(w_ref, b_ref, x_ref, o_ref, acc_ref):
    # Same GEMM with the contraction dim K tiled; f32 accumulator resident in VMEM.
    @pl.when(pl.program_id(2) == 0)
    def _():
        acc_ref[...] = jnp.zeros_like(acc_ref)

    acc_ref[...] += jnp.dot(w_ref[...], x_ref[0], preferred_element_type=jnp.float32)

    @pl.when(pl.program_id(2) == pl.num_programs(2) - 1)
    def _():
        o_ref[0] = (acc_ref[...] + b_ref[...].astype(jnp.float32)).astype(o_ref.dtype)


# ----------------------------------------------------------------------------
# Tiling heuristics
# ----------------------------------------------------------------------------
def _choose_tiling(m, k, n, itemsize, force_k_block=None):
    """Pick (k_block, lane_block).  k_block == k keeps the weight whole & VMEM-resident
    (preferred, no accumulator); otherwise the contraction dim is tiled."""

    def lane_for(kb, tiled):
        resident = 2 * (n * kb + n) * itemsize                 # dbl-buffered weight+bias
        per_lane = 2 * (kb + n) * itemsize + (4 * n if tiled else 0)   # x + out (+ f32 acc)
        avail = _BLOCK_BUDGET_BYTES - resident
        if avail < per_lane * 128:
            return None
        lanes = int(avail // per_lane)
        if lanes >= m:
            return m                                           # full extent: always legal
        return max(128, (lanes // 128) * 128)                  # multiple of 128 lanes

    if force_k_block is not None and force_k_block < k:
        assert k % force_k_block == 0 and force_k_block % 128 == 0, \
            "forced k_block must be a multiple of 128 that divides d_embed"
        lb = lane_for(force_k_block, True)
        return force_k_block, (lb if lb is not None else (m if m <= 128 else 128))

    lb = lane_for(k, False)
    if lb is not None:
        return k, lb

    # Weight too large to keep resident: tile K (largest mult-of-128 divisor that fits).
    for kb in sorted((d for d in range(128, k, 128) if k % d == 0), reverse=True):
        lb = lane_for(kb, True)
        if lb is not None:
            return kb, lb
    # Degenerate fallback: whole K, minimum legal lane block (vmem_limit gives headroom).
    return k, (m if m <= 128 else 128)


# ----------------------------------------------------------------------------
# Pallas wrapper: o[b, n, m] = sum_k w2dT[n, k] * x3d[b, k, m] + bias2d[n, 0]
# ----------------------------------------------------------------------------
def _unpatch_gemm(x3d, w2dT, bias2d, *, out_dtype=None, lane_block=None, k_block=None):
    B, K, M = x3d.shape
    N, K2 = w2dT.shape
    assert K == K2 and bias2d.shape == (N, 1)
    out_dtype = out_dtype or x3d.dtype
    itemsize = jnp.dtype(x3d.dtype).itemsize

    kb, auto_lb = _choose_tiling(M, K, N, itemsize, force_k_block=k_block)
    lb = auto_lb if lane_block is None else int(lane_block)
    lb = int(min(lb, M))
    if lb < M:
        lb = max(128, (lb // 128) * 128)   # multiple of 128 lanes (edge block masked)
    n_m = pl.cdiv(M, lb)

    if kb == K:
        # Whole-K path: weight + bias resident, single matmul per block, no accumulator.
        return pl.pallas_call(
            _unpatch_gemm_kernel,
            out_shape=jax.ShapeDtypeStruct((B, N, M), out_dtype),
            grid_spec=pltpu.PrefetchScalarGridSpec(
                num_scalar_prefetch=0,
                grid=(B, n_m),
                in_specs=[
                    pl.BlockSpec((N, K), lambda b, m: (0, 0)),        # weight: resident
                    pl.BlockSpec((N, 1), lambda b, m: (0, 0)),        # bias:   resident
                    pl.BlockSpec((1, K, lb), lambda b, m: (b, 0, m)),
                ],
                out_specs=pl.BlockSpec((1, N, lb), lambda b, m: (b, 0, m)),
            ),
            compiler_params=pltpu.CompilerParams(
                dimension_semantics=("parallel", "parallel"),
                vmem_limit_bytes=_VMEM_LIMIT_BYTES),
        )(w2dT, bias2d, x3d)

    # K-tiled path: f32 accumulator resident across the (innermost) contraction axis.
    n_k = K // kb
    return pl.pallas_call(
        _unpatch_gemm_ktiled_kernel,
        out_shape=jax.ShapeDtypeStruct((B, N, M), out_dtype),
        grid_spec=pltpu.PrefetchScalarGridSpec(
            num_scalar_prefetch=0,
            grid=(B, n_m, n_k),
            in_specs=[
                pl.BlockSpec((N, kb), lambda b, m, k: (0, k)),
                pl.BlockSpec((N, 1), lambda b, m, k: (0, 0)),
                pl.BlockSpec((1, kb, lb), lambda b, m, k: (b, k, m)),
            ],
            out_specs=pl.BlockSpec((1, N, lb), lambda b, m, k: (b, 0, m)),
            scratch_shapes=[pltpu.VMEM((N, lb), jnp.float32)],
        ),
        compiler_params=pltpu.CompilerParams(
            dimension_semantics=("parallel", "parallel", "arbitrary"),
            vmem_limit_bytes=_VMEM_LIMIT_BYTES),
    )(w2dT, bias2d, x3d)


def conv_transpose3d_pallas(x, weight, bias, stride, *, compute_dtype=None,
                            lane_block=None, k_block=None):
    """Equivalent of fn.conv_transpose3d(x, weight, bias, stride) (no padding/dilation)."""
    B, D, T, H, W = x.shape
    Dw, C, pt, ph, pw = weight.shape
    assert D == Dw
    st, sh, sw = stride
    To, Ho, Wo = (T - 1) * st + pt, (H - 1) * sh + ph, (W - 1) * sw + pw
    N = C * pt * ph * pw
    out_dtype = x.dtype
    cdt = compute_dtype or x.dtype      # e.g. jnp.bfloat16 for full-rate MXU (looser tol)

    # Activation stays in native NCDHW layout: free reshape, no HBM transpose / pad.
    x3d = x.reshape(B, D, T * H * W).astype(cdt)
    # Weight / bias prep is tiny (one [K, N] -> [N, K] transpose of the small weight).
    w2dT = jnp.swapaxes(weight.reshape(D, N), 0, 1).astype(cdt)     # [N, K]

    bias_c = bias if bias is not None else jnp.zeros((C,), out_dtype)
    non_overlapping = (st, sh, sw) == (pt, ph, pw)
    if non_overlapping:
        # Each output element gets exactly one patch contribution -> fuse bias in GEMM.
        bias2d = jnp.repeat(bias_c, pt * ph * pw).reshape(N, 1).astype(cdt)
    else:
        bias2d = jnp.zeros((N, 1), cdt)

    o2d = _unpatch_gemm(x3d, w2dT, bias2d, out_dtype=out_dtype,
                        lane_block=lane_block, k_block=k_block)     # [B, N, T*H*W]
    patches = o2d.reshape(B, C, pt, ph, pw, T, H, W)

    if non_overlapping:
        # Single fused reshape->transpose->reshape: one HBM pass over the output.
        out = jnp.transpose(patches, (0, 1, 5, 2, 6, 3, 7, 4)).reshape(B, C, To, Ho, Wo)
    else:
        # TODO(synk): fuse this overlap-add (stride < patch_size, rare path) into a
        # Pallas kernel instead of pt*ph*pw strided read-modify-write passes.
        out = jnp.zeros((B, C, To, Ho, Wo), out_dtype)
        for kt in range(pt):
            for kh in range(ph):
                for kw in range(pw):
                    out = out.at[:, :,
                                 kt:kt + (T - 1) * st + 1:st,
                                 kh:kh + (H - 1) * sh + 1:sh,
                                 kw:kw + (W - 1) * sw + 1:sw].add(
                                     patches[:, :, kt, kh, kw].astype(out_dtype))
        if bias is not None:
            out = out + bias_c.astype(out_dtype)[None, :, None, None, None]
    return out


class UnPatchEmbed3d:
    """JAX/Pallas port of the PyTorch UnPatchEmbed3d module."""

    def __init__(self, patch_size, stride, channels, d_embed, bias=True, *, key):
        self.patch_size = tuple(patch_size)
        self.stride = tuple(stride)
        self.channels = channels
        self.d_embed = d_embed
        kw, kb = jax.random.split(key)
        fan_in = d_embed * int(np.prod(patch_size))
        bound = 1.0 / np.sqrt(fan_in)
        # ConvTranspose3d weight layout: [in_channels=d_embed, out_channels, kT, kH, kW]
        self.weight = jax.random.uniform(
            kw, (d_embed, channels) + self.patch_size,
            minval=-bound, maxval=bound, dtype=jnp.float32)
        self.bias = (jax.random.uniform(kb, (channels,), minval=-bound, maxval=bound,
                                        dtype=jnp.float32) if bias else None)

    # ----- patch-embed resizing (parameter preprocessing, plain JAX glue) -----
    @staticmethod
    def _resize(x, shape):
        # TODO(synk): jax.image.resize half-pixel trilinear may differ slightly from
        # torch fn.interpolate(mode='trilinear', align_corners=False) at boundaries.
        return jax.image.resize(x, shape, method='trilinear', antialias=False)

    def _calculate_pinv(self, old_shape: Tuple, new_shape: Tuple):
        n_old = int(np.prod(old_shape))
        basis = jnp.eye(n_old, dtype=jnp.float32).reshape((n_old,) + tuple(old_shape))
        resize_mat = jax.vmap(
            lambda b: self._resize(b, new_shape).reshape(-1))(basis)
        return jnp.linalg.pinv(resize_mat)

    def resize_patch_embed(self, patch_embed, new_patch_size: Tuple):
        if self.patch_size == tuple(new_patch_size):
            return patch_embed
        pinv = self._calculate_pinv(self.patch_size, new_patch_size)
        D, C = patch_embed.shape[:2]
        flat = patch_embed.reshape(D, C, -1)
        resampled = jnp.einsum('np,dcp->dcn', pinv, flat)
        return resampled.reshape((D, C) + tuple(new_patch_size))

    # ----- forward -----
    def __call__(self, x, patch_size: Tuple, stride: Tuple, *, compute_dtype=None):
        patch_size = tuple(patch_size)
        stride = tuple(stride)
        if patch_size == self.patch_size:
            weight = self.weight
        else:
            weight = self.resize_patch_embed(self.weight, patch_size)
        return conv_transpose3d_pallas(x, weight, self.bias, stride,
                                       compute_dtype=compute_dtype)


def _ref_conv_transpose3d(x, w, b, stride):
    """Explicit scatter-add reference for conv_transpose3d (numpy)."""
    x = np.asarray(x); w = np.asarray(w)
    B, D, T, H, W = x.shape
    _, C, pt, ph, pw = w.shape
    st, sh, sw = stride
    To, Ho, Wo = (T - 1) * st + pt, (H - 1) * sh + ph, (W - 1) * sw + pw
    out = np.zeros((B, C, To, Ho, Wo), np.float32)
    for t in range(T):
        for h in range(H):
            for ww in range(W):
                contrib = np.einsum('bd,dcxyz->bcxyz', x[:, :, t, h, ww], w)
                out[:, :, t * st:t * st + pt, h * sh:h * sh + ph,
                    ww * sw:ww * sw + pw] += contrib
    if b is not None:
        out += np.asarray(b)[None, :, None, None, None]
    return out


if __name__ == "__main__":
    key = jax.random.PRNGKey(0)
    k_mod, k_x, k_mod2, k_x2 = jax.random.split(key, 4)

    patch_size = (2, 4, 4)
    stride = (2, 4, 4)
    channels = 4
    d_embed = 32
    B, T, H, W = 2, 3, 4, 4

    module = UnPatchEmbed3d(patch_size, stride, channels, d_embed, bias=True, key=k_mod)
    x = jax.random.normal(k_x, (B, d_embed, T, H, W), dtype=jnp.float32)

    # 1) Non-overlapping (stride == patch_size): whole-K resident Pallas GEMM + fused
    #    bias + single un-patchify transpose.
    out = jax.block_until_ready(module(x, patch_size, stride))
    ref = _ref_conv_transpose3d(x, module.weight, module.bias, stride)
    assert out.shape == ref.shape, (out.shape, ref.shape)
    np.testing.assert_allclose(np.asarray(out), ref, rtol=2e-5, atol=2e-5)

    # 2) Overlapping-stride fallback path (same Pallas GEMM, overlap-add in JAX).
    stride_ov = (1, 2, 2)
    out_ov = jax.block_until_ready(module(x, patch_size, stride_ov))
    ref_ov = _ref_conv_transpose3d(x, module.weight, module.bias, stride_ov)
    assert out_ov.shape == ref_ov.shape, (out_ov.shape, ref_ov.shape)
    np.testing.assert_allclose(np.asarray(out_ov), ref_ov, rtol=2e-5, atol=2e-5)

    # 3) K-tiled accumulator path (used automatically for very large d_embed); forced
    #    here with a small d_embed=256 / k_block=128 so the path is exercised on TPU.
    d_embed2 = 256
    module2 = UnPatchEmbed3d(patch_size, stride, channels, d_embed2, bias=True, key=k_mod2)
    x2 = jax.random.normal(k_x2, (B, d_embed2, T, H, W), dtype=jnp.float32)
    out_kt = jax.block_until_ready(
        conv_transpose3d_pallas(x2, module2.weight, module2.bias, stride, k_block=128))
    ref_kt = _ref_conv_transpose3d(x2, module2.weight, module2.bias, stride)
    assert out_kt.shape == ref_kt.shape, (out_kt.shape, ref_kt.shape)
    np.testing.assert_allclose(np.asarray(out_kt), ref_kt, rtol=1e-4, atol=1e-4)

    print("KERNEL_OK")
</pallas_src>

<mosaic_0001>
module attributes {stable_mosaic.version = 11 : i64} {
  func.func @_unpatch_gemm_kernel(%arg0: i32, %arg1: i32, %arg2: memref<128x32xf32, #tpu.memory_space<vmem>>, %arg3: memref<128x1xf32, #tpu.memory_space<vmem>>, %arg4: memref<1x32x48xf32, #tpu.memory_space<vmem>>, %arg5: memref<1x128x48xf32, #tpu.memory_space<vmem>>) attributes {dimension_semantics = [#tpu.dimension_semantics<parallel>, #tpu.dimension_semantics<parallel>], iteration_bounds = array<i64: 2, 1>, scalar_prefetch = 0 : i64, scratch_operands = 0 : i64, tpu.core_type = #tpu.core_type<tc>, window_params = [{pipeline_mode = #tpu.pipeline_mode<synchronous>, transform_indices = @transform_0, window_bounds = array<i64: 128, 32>}, {pipeline_mode = #tpu.pipeline_mode<synchronous>, transform_indices = @transform_1, window_bounds = array<i64: 128, 1>}, {transform_indices = @transform_2, window_bounds = array<i64: 1, 32, 48>}, {transform_indices = @transform_3, window_bounds = array<i64: 1, 128, 48>}]} {
    %c0 = arith.constant 0 : index
    %c0_0 = arith.constant 0 : index
    %0 = vector.load %arg2[%c0, %c0_0] : memref<128x32xf32, #tpu.memory_space<vmem>>, vector<128x32xf32>
    %c0_1 = arith.constant 0 : index
    %c0_2 = arith.constant 0 : index
    %c0_3 = arith.constant 0 : index
    %1 = vector.load %arg4[%c0_1, %c0_2, %c0_3] : memref<1x32x48xf32, #tpu.memory_space<vmem>>, vector<1x32x48xf32>
    %2 = vector.shape_cast %1 : vector<1x32x48xf32> to vector<32x48xf32>
    %cst = arith.constant dense<0.000000e+00> : vector<128x48xf32>
    %3 = tpu.matmul %0, %2, %cst {dimension_numbers = #tpu.dot_dimension_numbers<[1], [0], [0], [1], [0, 0, 1, 1], [], []>} : vector<128x32xf32>, vector<32x48xf32>, vector<128x48xf32> -> vector<128x48xf32>
    %c0_4 = arith.constant 0 : index
    %c0_5 = arith.constant 0 : index
    %4 = vector.load %arg3[%c0_4, %c0_5] : memref<128x1xf32, #tpu.memory_space<vmem>>, vector<128x1xf32>
    %5 = vector.broadcast %4 : vector<128x1xf32> to vector<128x48xf32>
    %6 = arith.addf %3, %5 : vector<128x48xf32>
    %c0_6 = arith.constant 0 : index
    %c0_7 = arith.constant 0 : index
    %c0_8 = arith.constant 0 : index
    %7 = vector.load %arg5[%c0_6, %c0_7, %c0_8] : memref<1x128x48xf32, #tpu.memory_space<vmem>>, vector<1x128x48xf32>
    %8 = vector.shape_cast %7 : vector<1x128x48xf32> to vector<128x48xf32>
    %9 = vector.shape_cast %6 : vector<128x48xf32> to vector<1x128x48xf32>
    tpu.vector_store %arg5[%c0_6, %c0_7, %c0_8], %9 {strides = array<i32>} : memref<1x128x48xf32, #tpu.memory_space<vmem>>, vector<1x128x48xf32>,
    return
  }
  func.func @transform_0(%arg0: i32, %arg1: i32) -> (i32, i32) {
    %c0_i32 = arith.constant 0 : i32
    %c0_i32_0 = arith.constant 0 : i32
    %c0_i32_1 = arith.constant 0 : i32
    return %c0_i32, %c0_i32_0 : i32, i32
  }
  func.func @transform_1(%arg0: i32, %arg1: i32) -> (i32, i32) {
    %c0_i32 = arith.constant 0 : i32
    %c0_i32_0 = arith.constant 0 : i32
    %c0_i32_1 = arith.constant 0 : i32
    return %c0_i32, %c0_i32_0 : i32, i32
  }
  func.func @transform_2(%arg0: i32, %arg1: i32) -> (i32, i32, i32) {
    %c0_i32 = arith.constant 0 : i32
    %c0_i32_0 = arith.constant 0 : i32
    return %arg0, %c0_i32, %arg1 : i32, i32, i32
  }
  func.func @transform_3(%arg0: i32, %arg1: i32) -> (i32, i32, i32) {
    %c0_i32 = arith.constant 0 : i32
    %c0_i32_0 = arith.constant 0 : i32
    return %arg0, %c0_i32, %arg1 : i32, i32, i32
  }
}

</mosaic_0001>

<bundles_post_ra>
// kernel: tpu_custom_call.1
= control target key start
LH: loop header
LB: loop body
LE: loop exit
PB: predicated region body
PF: predicated region fallthrough
CT: control target
= control target key end

     0   :  { %s773_s12 = smov 0   ;;  %s775_s13 = smov 0   ;;  %s956_s0 = inlined_call_operand.vmem [shape: f32[128,32], index: 0, kind: input, shape index: {}]   ;;  %s957_s1 = inlined_call_operand.vmem [shape: f32[128,1], index: 1, kind: input, shape index: {}]   ;;  %s958_s2 = inlined_call_operand.vmem [shape: f32[2,32,48], index: 2, kind: input, shape index: {}]   ;;  %s959_s3 = inlined_call_operand.vmem [shape: f32[2,128,48], index: 3, kind: output, shape index: {}]  }
   0x1   :  { %s777_s14 = smov 0  }
   0x2 LB: > { %s25_s15 = sadd.s32 1, %s746_s13  ;;  %p616_p0 = scmp.ge.s32.totalorder %s750_s14, 1  ;;  %s750_s14 = sphi %s777_s14, %s13_s14   ;;  %s746_s13 = sphi %s775_s13, %s961_s13   ;;  %s742_s12 = sphi %s773_s12, %s960_s12  }
   0x3   : > { %p27_p1 = scmp.ge.s32.totalorder %s25_s15, 2  ;;  %p156_p2 = scmp.lt.s32.totalorder %s750_s14, 3 }
   0x5   : > { %s963_s15 = smov (%p27_p1, %s25_s15), 0  ;;  %p157_p3 = pnand %p616_p0, %p156_p2 }
   0x6   : > { %p186_p4 = scmp.lt.s32.totalorder (!%p157_p3), %s742_s12, 1 }
   0x7   : > { %160 = sbr.rel (%p157_p3) target bundleno = 234 (0xea), region = 32 }
   0xc   : > { %v202_v0 = vld [vmem:[%s956_s0] sm:$0xff]  ;;  %vm318_vm0 = vcmask 261120   ;;  %s965_s12 = smov (!%p186_p4, %s742_s12), 1  ;;  %v752_v2 = vmov 0   ;;  %v224_v3 = vld [vmem:[%s957_s1 + $0x10] sm:$0xff]  ;;  %v203_v9 = vld [vmem:[%s956_s0 + $0x8] sm:$0xff] }
   0xd   : > { %v210_v1 = vld [vmem:[%s956_s0 + $0x40] sm:$0xff]  ;;  %669 = vmatprep.mubr.msk.f32.mxu0 %vm318_vm0, %v202_v0  ;;  %727 = vset.pattern.permute.xlu1 %v752_v2  ;;  %s639_s20 = sshll.u32 %s965_s12, 5  ;;  %v211_v10 = vld [vmem:[%s956_s0 + $0x48] sm:$0xff]  ;;  %v204_v11 = vld [vmem:[%s956_s0 + $0x10] sm:$0xff]  ;;  %s640_s11 = sshll.u32 %s965_s12, 7  ;;  %vm512_vm1 = vcmask 392192  }
   0xe   : > { %681 = vmatprep.mubr.msk.f32.mxu1 %vm318_vm0, %v210_v1  ;;  %726 = vset.pattern.permute.xlu0 %v752_v2  ;;  %s193_s23 = scalar_lea.vmem %s958_s2, %s639_s20  ;;  %v222_v4 = vld [vmem:[%s957_s1] sm:$0xff]  ;;  %v212_v12 = vld [vmem:[%s956_s0 + $0x50] sm:$0xff]  ;;  %v225_v13 = vld [vmem:[%s957_s1 + $0x18] sm:$0xff]  ;;  %s913_s18 = scalar_lea.vmem %s959_s3, %s640_s11 }
   0xf   : > { %v221_v5 = vld [vmem:[%s193_s23 + $0x18] sm:$0xff]  ;;  %v220_v6 = vld [vmem:[%s193_s23 + $0x10] sm:$0xff]  ;;  %250 = vperm.xlu1 %727, %v224_v3   ;;  %240 = vperm.xlu0 %726, %v222_v4   ;;  %v219_v7 = vld [vmem:[%s193_s23 + $0x8] sm:$0xff] }
  0x10   : > { %661 = vmatprep.subr.mxu0 %v221_v5  ;;  %693 = vmatprep.subr.mxu1 %v221_v5  ;;  %v218_v8 = vld [vmem:[%s193_s23] sm:$0xff]  ;;  %v223_v14 = vld [vmem:[%s957_s1 + $0x8] sm:$0xff]  ;;  %v205_v15 = vld [vmem:[%s956_s0 + $0x18] sm:$0xff] }
  0x11   : > { %662 = vmatpush3.msra.mxu0 %v221_v5  ;;  %697 = vmatpush3.msra.mxu1 %v221_v5  ;;  %v213_v16 = vld [vmem:[%s956_s0 + $0x58] sm:$0xff]  ;;  %v206_v17 = vld [vmem:[%s956_s0 + $0x20] sm:$0xff]  ;;  %v227_v19 = vld [vmem:[%s957_s1 + $0x28] sm:$0xff] }
  0x12   : > { %663 = vmatprep.subr.mxu0 %v220_v6  ;;  %694 = vmatprep.subr.mxu1 %v220_v6  ;;  %v214_v18 = vld [vmem:[%s956_s0 + $0x60] sm:$0xff]  ;;  %v207_v21 = vld [vmem:[%s956_s0 + $0x28] sm:$0xff]  ;;  %v208_v23 = vld [vmem:[%s956_s0 + $0x30] sm:$0xff] }
  0x13   : > { %664 = vmatpush3.msra.mxu0 %v220_v6  ;;  %698 = vmatpush3.msra.mxu1 %v220_v6  ;;  %v226_v20 = vld [vmem:[%s957_s1 + $0x20] sm:$0xff]  ;;  %v215_v22 = vld [vmem:[%s956_s0 + $0x68] sm:$0xff]  ;;  %v216_v24 = vld [vmem:[%s956_s0 + $0x70] sm:$0xff] }
  0x14   : > { %665 = vmatprep.subr.mxu0 %v219_v7  ;;  %695 = vmatprep.subr.mxu1 %v219_v7  ;;  %v229_v25 = vld [vmem:[%s957_s1 + $0x38] sm:$0xff]  ;;  %v228_v26 = vld [vmem:[%s957_s1 + $0x30] sm:$0xff]  ;;  %v231_v29 = vld [vmem:[%s957_s1 + $0x48] sm:$0xff] }
  0x15   : > { %666 = vmatpush3.msra.mxu0 %v219_v7  ;;  %699 = vmatpush3.msra.mxu1 %v219_v7  ;;  %v209_v27 = vld [vmem:[%s956_s0 + $0x38] sm:$0xff]  ;;  %v230_v30 = vld [vmem:[%s957_s1 + $0x40] sm:$0xff]  ;;  %v232_v32 = vld [vmem:[%s957_s1 + $0x50] sm:$0xff] }
  0x16   : > { %667 = vmatprep.subr.mxu0 %v218_v8  ;;  %696 = vmatprep.subr.mxu1 %v218_v8  ;;  %v217_v28 = vld [vmem:[%s956_s0 + $0x78] sm:$0xff]  ;;  %v235_v33 = vld [vmem:[%s957_s1 + $0x68] sm:$0xff]  ;;  %v234_v34 = vld [vmem:[%s957_s1 + $0x60] sm:$0xff] }
  0x17   : > { %668 = vmatpush3.msra.mxu0 %v218_v8  ;;  %700 = vmatpush3.msra.mxu1 %v218_v8  ;;  %v233_v31 = vld [vmem:[%s957_s1 + $0x58] sm:$0xff]  ;;  %v236_v36 = vld [vmem:[%s957_s1 + $0x70] sm:$0xff] }
  0x18   : > { %670 = vmatmul.mubr.msk.f32.vlgmr.msra.gmra.mxu0 %vm318_vm0, %v203_v9  ;;  %682 = vmatmul.mubr.msk.f32.vlgmr.msra.gmra.mxu1 %vm318_vm0, %v211_v10  ;;  %v237_v35 = vld [vmem:[%s957_s1 + $0x78] sm:$0xff] }
  0x19   : > { %672 = vmatprep.mubr.msk.f32.mxu0 %vm318_vm0, %v204_v11  ;;  %684 = vmatprep.mubr.msk.f32.mxu1 %vm318_vm0, %v212_v12 }
  0x1a   : > { %255 = vperm.xlu1 %727, %v225_v13   ;;  %245 = vperm.xlu0 %726, %v223_v14  }
  0x1c   : > { %673 = vmatmul.mubr.msk.f32.gmra.mxu0 %vm318_vm0, %v205_v15  ;;  %685 = vmatmul.mubr.msk.f32.gmra.mxu1 %vm318_vm0, %v213_v16 }
  0x1d   : > { %675 = vmatprep.mubr.msk.f32.mxu0 %vm318_vm0, %v206_v17  ;;  %687 = vmatprep.mubr.msk.f32.mxu1 %vm318_vm0, %v214_v18 }
  0x1e   : > { %265 = vperm.xlu1 %727, %v227_v19   ;;  %260 = vperm.xlu0 %726, %v226_v20  }
  0x20   : > { %676 = vmatmul.mubr.msk.f32.gmra.mxu0 %vm318_vm0, %v207_v21  ;;  %688 = vmatmul.mubr.msk.f32.gmra.mxu1 %vm318_vm0, %v215_v22 }
  0x21   : > { %678 = vmatprep.mubr.msk.f32.mxu0 %vm318_vm0, %v208_v23  ;;  %690 = vmatprep.mubr.msk.f32.mxu1 %vm318_vm0, %v216_v24 }
  0x22   : > { %275 = vperm.xlu1 %727, %v229_v25   ;;  %270 = vperm.xlu0 %726, %v228_v26  }
  0x24   : > { %679 = vmatmul.mubr.msk.f32.gmra.mxu0 %vm318_vm0, %v209_v27  ;;  %691 = vmatmul.mubr.msk.f32.gmra.mxu1 %vm318_vm0, %v217_v28 }
  0x26   : > { %285 = vperm.xlu1 %727, %v231_v29   ;;  %280 = vperm.xlu0 %726, %v230_v30  }
  0x2a   : > { %295 = vperm.xlu1 %727, %v233_v31   ;;  %290 = vperm.xlu0 %726, %v232_v32  }
  0x2e   : > { %305 = vperm.xlu1 %727, %v235_v33   ;;  %300 = vperm.xlu0 %726, %v234_v34  }
  0x32   : > { %315 = vperm.xlu1 %727, %v237_v35   ;;  %310 = vperm.xlu0 %726, %v236_v36  }
  0x8a   : > { %v251_v37 = vpop.permute.xlu1 %250  ;;  %v241_v38 = vpop.permute.xlu0 %240 }
  0x95   : > { %v256_v39 = vpop.permute.xlu1 %255  ;;  %v246_v40 = vpop.permute.xlu0 %245 }
  0x99   : > { %v266_v41 = vpop.permute.xlu1 %265  ;;  %v261_v42 = vpop.permute.xlu0 %260 }
  0x9d   : > { %v276_v43 = vpop.permute.xlu1 %275  ;;  %v271_v44 = vpop.permute.xlu0 %270 }
  0xa1   : > { %v286_v45 = vpop.permute.xlu1 %285  ;;  %v281_v46 = vpop.permute.xlu0 %280 }
  0xa5   : > { %v296_v47 = vpop.permute.xlu1 %295  ;;  %v291_v50 = vpop.permute.xlu0 %290 }
  0xa9   : > { %v306_v59 = vpop.permute.xlu1 %305  ;;  %v301_v0 = vpop.permute.xlu0 %300 }
  0xad   : > { %v316_v9 = vpop.permute.xlu1 %315  ;;  %v311_v14 = vpop.permute.xlu0 %310 }
  0xd8   : > { %v671_v48 = vpop.f32.mrf.mxu0  ;;  %v683_v49 = vpop.f32.mrf.mxu1 }
  0xd9   : > { %v439_v51 = vadd.f32 %v671_v48, %v246_v40  ;;  %v479_v52 = vadd.f32 %v683_v49, %v286_v45 }
  0xda   : > { %v433_v53 = vpop.f32.mrf.mxu0  ;;  %v473_v54 = vpop.f32.mrf.mxu1 }
  0xdb   : > { %514 = vst.msk [vmem:[%s913_s18 + $0x8] sm:$0xff] %vm512_vm1, %v439_v51  ;;  %522 = vst.msk [vmem:[%s913_s18 + $0x48] sm:$0xff] %vm512_vm1, %v479_v52  ;;  %v434_v55 = vadd.f32 %v433_v53, %v241_v38  ;;  %v474_v56 = vadd.f32 %v473_v54, %v281_v46 }
  0xdc   : > { %v674_v57 = vpop.f32.mrf.mxu0  ;;  %v686_v58 = vpop.f32.mrf.mxu1 }
  0xdd   : > { %513 = vst.msk [vmem:[%s913_s18] sm:$0xff] %vm512_vm1, %v434_v55  ;;  %521 = vst.msk [vmem:[%s913_s18 + $0x40] sm:$0xff] %vm512_vm1, %v474_v56  ;;  %v449_v60 = vadd.f32 %v674_v57, %v256_v39  ;;  %v489_v61 = vadd.f32 %v686_v58, %v296_v47 }
  0xde   : > { %v443_v62 = vpop.f32.mrf.mxu0  ;;  %v483_v63 = vpop.f32.mrf.mxu1 }
  0xdf   : > { %516 = vst.msk [vmem:[%s913_s18 + $0x18] sm:$0xff] %vm512_vm1, %v449_v60  ;;  %524 = vst.msk [vmem:[%s913_s18 + $0x58] sm:$0xff] %vm512_vm1, %v489_v61  ;;  %v444_v1 = vadd.f32 %v443_v62, %v251_v37  ;;  %v484_v2 = vadd.f32 %v483_v63, %v291_v50 }
  0xe0   : > { %v677_v3 = vpop.f32.mrf.mxu0  ;;  %v689_v4 = vpop.f32.mrf.mxu1 }
  0xe1   : > { %515 = vst.msk [vmem:[%s913_s18 + $0x10] sm:$0xff] %vm512_vm1, %v444_v1  ;;  %523 = vst.msk [vmem:[%s913_s18 + $0x50] sm:$0xff] %vm512_vm1, %v484_v2  ;;  %v459_v5 = vadd.f32 %v677_v3, %v266_v41  ;;  %v499_v6 = vadd.f32 %v689_v4, %v306_v59 }
  0xe2   : > { %v453_v7 = vpop.f32.mrf.mxu0  ;;  %v493_v8 = vpop.f32.mrf.mxu1 }
  0xe3   : > { %518 = vst.msk [vmem:[%s913_s18 + $0x28] sm:$0xff] %vm512_vm1, %v459_v5  ;;  %526 = vst.msk [vmem:[%s913_s18 + $0x68] sm:$0xff] %vm512_vm1, %v499_v6  ;;  %v454_v10 = vadd.f32 %v453_v7, %v261_v42  ;;  %v494_v11 = vadd.f32 %v493_v8, %v301_v0 }
  0xe4   : > { %v680_v12 = vpop.f32.mrf.mxu0  ;;  %v692_v13 = vpop.f32.mrf.mxu1 }
  0xe5   : > { %517 = vst.msk [vmem:[%s913_s18 + $0x20] sm:$0xff] %vm512_vm1, %v454_v10  ;;  %525 = vst.msk [vmem:[%s913_s18 + $0x60] sm:$0xff] %vm512_vm1, %v494_v11  ;;  %v469_v15 = vadd.f32 %v680_v12, %v276_v43  ;;  %v509_v16 = vadd.f32 %v692_v13, %v316_v9 }
  0xe6   : > { %v463_v17 = vpop.f32.mrf.mxu0  ;;  %v503_v18 = vpop.f32.mrf.mxu1 }
  0xe7   : > { %520 = vst.msk [vmem:[%s913_s18 + $0x38] sm:$0xff] %vm512_vm1, %v469_v15  ;;  %528 = vst.msk [vmem:[%s913_s18 + $0x78] sm:$0xff] %vm512_vm1, %v509_v16  ;;  %v464_v19 = vadd.f32 %v463_v17, %v271_v44  ;;  %v504_v20 = vadd.f32 %v503_v18, %v311_v14 }
  0xe9   : > { %519 = vst.msk [vmem:[%s913_s18 + $0x30] sm:$0xff] %vm512_vm1, %v464_v19  ;;  %527 = vst.msk [vmem:[%s913_s18 + $0x70] sm:$0xff] %vm512_vm1, %v504_v20 }
  0xea PF: > { %s13_s14 = sadd.s32 1, %s750_s14   ;;  %s960_s12 = smov %s746_s13 }
  0xeb   : > { %p10_p5 = scmp.ge.s32.totalorder %s13_s14, 4   ;;  %s961_s13 = smov %s963_s15 }
  0xed   :  { %12 = sbr.rel (!%p10_p5) target bundleno = 2 (0x2), region = 62 }

</bundles_post_ra>
